<compile_context>
chip_gen: v7x
topology: tpu7x:2x2x1
jax: 0.10.0
libtpu: 0.0.40
codegen_flags: <defaults>
</compile_context>

<pallas_src>
import functools
import math

import jax
import jax.numpy as jnp
from jax import lax
from jax.experimental import pallas as pl
from jax.experimental.pallas import tpu as pltpu


def _round_up(x, m):
    return (x + m - 1) // m * m


def _midblock_kernel(x_ref, w_ref, temb_ref, s_ref, gam_ref, bet_ref, mask_ref,
                     o_ref, *, shifts, nq, eps):
    # x_ref   : (Bt, Cin_p, Lin_p)   bf16  raw input, spatial flattened + padded
    # w_ref   : (K*K, Cout_p, Cin_p) bf16  conv weight, one tap per leading idx
    # temb_ref: (Bt, Cout_p, 1)      f32   Dense(embed) + dense bias + conv bias
    # s_ref   : (Cout_p, Cout_p)     f32   group-mean spreading matrix
    # gam_ref / bet_ref: (Cout_p, 1) f32   GroupNorm affine
    # mask_ref: (1, nq)              f32   1.0 on valid (strided) output pixels
    # o_ref   : (Bt, Cout_p, nq)     f32
    mask = mask_ref[...]
    bt = o_ref.shape[0]
    for bi in range(bt):
        xb = x_ref[bi]                                   # (Cin_p, Lin_p) bf16

        # Conv as K*K accumulated MXU matmuls on lane-shifted views (f32 acc).
        acc = jnp.zeros(o_ref.shape[1:], jnp.float32)    # (Cout_p, nq)
        for kk, d in enumerate(shifts):
            acc += jnp.dot(w_ref[kk], xb[:, d:d + nq],
                           preferred_element_type=jnp.float32)

        # + Dense(embed) (+ biases), broadcast over all spatial lanes.
        h = acc + temb_ref[bi]                           # (Cout_p, nq)

        # GroupNorm: masked per-channel sums -> per-group mean/E[x^2] broadcast
        # back per channel via one tiny matmul each (no row slicing / concat).
        hm = h * mask
        hsum = jnp.sum(hm, axis=1, keepdims=True)        # (Cout_p, 1)
        hsq = jnp.sum(hm * h, axis=1, keepdims=True)     # (Cout_p, 1)
        mean = jnp.dot(s_ref[...], hsum, preferred_element_type=jnp.float32)
        msq = jnp.dot(s_ref[...], hsq, preferred_element_type=jnp.float32)
        var = msq - mean * mean
        rstd = lax.rsqrt(var + eps)

        scale = rstd * gam_ref[...]
        shift = bet_ref[...] - mean * scale
        hn = h * scale + shift

        # Swish / SiLU; one lane-dense full-width store per batch element.
        o_ref[bi] = hn * jax.nn.sigmoid(hn)


@functools.partial(jax.jit, static_argnames=("stride", "num_groups", "eps"))
def midblock_t_forward(x, embed, conv_w, conv_b, dense_w, dense_b,
                       gamma, beta, *, stride, num_groups, eps=1e-6):
    """x: (B, Cin, H, W), embed: (B, E) -> (B, Cout, Ho, Wo) float32."""
    B, Cin, H, W = x.shape
    Cout, _, K, _ = conv_w.shape
    assert Cout % num_groups == 0, "num_groups must divide out_cn"

    Ho = (H - K) // stride + 1
    Wo = (W - K) // stride + 1
    Hd = (Ho - 1) * stride + 1                  # dense (stride-1) rows we compute

    Cin_p = _round_up(Cin, 8)
    Cout_p = _round_up(Cout, 8)
    nq = _round_up(Hd * W, 128)                 # lane-dense flattened output width
    max_shift = (K - 1) * W + (K - 1)
    lin_p = _round_up(nq + max_shift, 128)      # padded input flat length

    # ---- layout prep: cheap reshapes/pads only, no K^2 im2col blow-up -------
    xf = x.reshape(B, Cin, H * W).astype(jnp.float32)
    xf = jnp.pad(xf, ((0, 0), (0, Cin_p - Cin), (0, lin_p - H * W)))
    xf = xf.astype(jnp.bfloat16)                               # bf16 MXU operand

    wt = jnp.transpose(conv_w.astype(jnp.float32), (2, 3, 0, 1)).reshape(
        K * K, Cout, Cin)
    wt = jnp.pad(wt, ((0, 0), (0, Cout_p - Cout),
                      (0, Cin_p - Cin))).astype(jnp.bfloat16)

    # Hoisted Dense(embed) + dense bias + conv bias  -> (B, Cout_p, 1) f32.
    temb = (jnp.dot(embed.astype(jnp.float32), dense_w.astype(jnp.float32).T,
                    precision=lax.Precision.HIGHEST)
            + dense_b.astype(jnp.float32) + conv_b.astype(jnp.float32))
    temb = jnp.pad(temb, ((0, 0), (0, Cout_p - Cout)))[:, :, None]

    # Valid-output-pixel mask over the dense flat axis (handles stride + edges).
    q = jnp.arange(nq)
    hq, wq = q // W, q % W
    valid = ((hq % stride == 0) & (hq // stride < Ho)
             & (wq % stride == 0) & (wq // stride < Wo))
    mask = valid.astype(jnp.float32)[None, :]                   # (1, nq)

    # Group-mean spreading matrix: (S @ per_channel_sum)[c] = group-mean of c.
    cpg = Cout // num_groups
    cid = jnp.arange(Cout_p)
    same_group = (cid[:, None] // cpg) == (cid[None, :] // cpg)
    in_range = (cid[:, None] < Cout) & (cid[None, :] < Cout)
    S = jnp.where(same_group & in_range,
                  1.0 / float(cpg * Ho * Wo), 0.0).astype(jnp.float32)

    gam = jnp.pad(gamma.astype(jnp.float32), (0, Cout_p - Cout))[:, None]
    bet = jnp.pad(beta.astype(jnp.float32), (0, Cout_p - Cout))[:, None]

    # Batch elements per grid step (amortize ~0.35us/step + tiny DMAs).
    per_sample = Cin_p * lin_p * 2 + Cout_p * nq * 4
    bt = 1
    for cand in range(1, min(B, 8) + 1):
        if B % cand == 0 and 2 * cand * per_sample <= (8 << 20):
            bt = cand

    shifts = tuple(kh * W + kw for kh in range(K) for kw in range(K))
    kernel = functools.partial(_midblock_kernel, shifts=shifts, nq=nq,
                               eps=float(eps))

    cost = pl.CostEstimate(
        flops=2 * B * (K * K) * Cout_p * Cin_p * nq,
        transcendentals=B * Cout_p * nq,
        bytes_accessed=xf.size * 2 + B * Cout_p * nq * 4 + wt.size * 2)

    vmem_limit = min(64 << 20,                       # v7x-safe upper bound
                     max(32 << 20, 4 * bt * per_sample + (4 << 20)))

    out = pl.pallas_call(
        kernel,
        out_shape=jax.ShapeDtypeStruct((B, Cout_p, nq), jnp.float32),
        grid=(B // bt,),
        in_specs=[
            pl.BlockSpec((bt, Cin_p, lin_p), lambda g: (g, 0, 0)),      # x
            pl.BlockSpec((K * K, Cout_p, Cin_p), lambda g: (0, 0, 0)),  # conv w
            pl.BlockSpec((bt, Cout_p, 1), lambda g: (g, 0, 0)),         # temb
            pl.BlockSpec((Cout_p, Cout_p), lambda g: (0, 0)),           # S
            pl.BlockSpec((Cout_p, 1), lambda g: (0, 0)),                # gamma
            pl.BlockSpec((Cout_p, 1), lambda g: (0, 0)),                # beta
            pl.BlockSpec((1, nq), lambda g: (0, 0)),                    # mask
        ],
        out_specs=pl.BlockSpec((bt, Cout_p, nq), lambda g: (g, 0, 0)),
        compiler_params=pltpu.CompilerParams(
            dimension_semantics=("parallel",),
            vmem_limit_bytes=vmem_limit),
        cost_estimate=cost,
    )(xf, wt, temb, S, gam, bet, mask)

    # Crop padded channels, drop garbage columns / apply stride, reshape.
    y = out[:, :Cout, :Hd * W].reshape(B, Cout, Hd, W)
    y = y[:, :, ::stride, ::stride][:, :, :Ho, :Wo]
    return y


if __name__ == "__main__":
    key = jax.random.PRNGKey(0)
    ks = jax.random.split(key, 8)

    # Small shapes consistent with the module; in_cn == out_cn so the module's
    # GroupNorm(num_channels=in_cn) applied after the conv is well-defined.
    B, Cin, H, W = 2, 4, 16, 16
    Cout, K, stride = 4, 3, 1
    gn = 2
    embed_dim = 32
    eps = 1e-6

    x = jax.random.normal(ks[0], (B, Cin, H, W), dtype=jnp.float32)
    embed = jax.random.normal(ks[1], (B, embed_dim), dtype=jnp.float32)

    fan_conv = Cin * K * K
    conv_w = (jax.random.uniform(ks[2], (Cout, Cin, K, K), jnp.float32, -1.0, 1.0)
              / math.sqrt(fan_conv))
    conv_b = (jax.random.uniform(ks[3], (Cout,), jnp.float32, -1.0, 1.0)
              / math.sqrt(fan_conv))
    dense_w = (jax.random.uniform(ks[4], (Cout, embed_dim), jnp.float32, -1.0, 1.0)
               / math.sqrt(embed_dim))
    dense_b = (jax.random.uniform(ks[5], (Cout,), jnp.float32, -1.0, 1.0)
               / math.sqrt(embed_dim))
    gamma = 1.0 + 0.1 * jax.random.normal(ks[6], (Cout,), dtype=jnp.float32)
    beta = 0.1 * jax.random.normal(ks[7], (Cout,), dtype=jnp.float32)

    out = midblock_t_forward(x, embed, conv_w, conv_b, dense_w, dense_b,
                             gamma, beta, stride=stride, num_groups=gn, eps=eps)
    out = jax.block_until_ready(out)

    # Pure-JAX f32 reference mirroring the PyTorch forward exactly.
    h_ref = lax.conv_general_dilated(
        x, conv_w, window_strides=(stride, stride), padding="VALID",
        dimension_numbers=("NCHW", "OIHW", "NCHW"),
        precision=lax.Precision.HIGHEST)
    h_ref = h_ref + conv_b[None, :, None, None]
    temb_ref = jnp.dot(embed, dense_w.T, precision=lax.Precision.HIGHEST) + dense_b
    h_ref = h_ref + temb_ref[:, :, None, None]
    Bc, Cc, Hh, Ww = h_ref.shape
    hg = h_ref.reshape(Bc, gn, Cc // gn, Hh, Ww)
    mu = hg.mean(axis=(2, 3, 4), keepdims=True)
    var = jnp.mean(jnp.square(hg - mu), axis=(2, 3, 4), keepdims=True)
    hn = ((hg - mu) / jnp.sqrt(var + eps)).reshape(Bc, Cc, Hh, Ww)
    hn = hn * gamma[None, :, None, None] + beta[None, :, None, None]
    ref = hn * jax.nn.sigmoid(hn)

    assert out.shape == ref.shape == (B, Cout, 14, 14)
    # Kernel uses bf16 MXU operands (f32 accumulation / stats), reference is
    # full f32 HIGHEST precision -> tolerance reflects bf16 input rounding.
    err = float(jnp.max(jnp.abs(out - ref)))
    assert err < 5e-2, f"max abs err = {err}"

    print("KERNEL_OK")
</pallas_src>

<mosaic_0001>
module attributes {stable_mosaic.version = 11 : i64} {
  func.func @_midblock_kernel(%arg0: i32, %arg1: memref<2x8x384xbf16, #tpu.memory_space<vmem>>, %arg2: memref<9x8x8xbf16, #tpu.memory_space<vmem>>, %arg3: memref<2x8x1xf32, #tpu.memory_space<vmem>>, %arg4: memref<8x8xf32, #tpu.memory_space<vmem>>, %arg5: memref<8x1xf32, #tpu.memory_space<vmem>>, %arg6: memref<8x1xf32, #tpu.memory_space<vmem>>, %arg7: memref<1x256xf32, #tpu.memory_space<vmem>>, %arg8: memref<2x8x256xf32, #tpu.memory_space<vmem>>) attributes {dimension_semantics = [#tpu.dimension_semantics<parallel>], iteration_bounds = array<i64: 1>, scalar_prefetch = 0 : i64, scratch_operands = 0 : i64, tpu.core_type = #tpu.core_type<tc>, window_params = [{transform_indices = @transform_0, window_bounds = array<i64: 2, 8, 384>}, {pipeline_mode = #tpu.pipeline_mode<synchronous>, transform_indices = @transform_1, window_bounds = array<i64: 9, 8, 8>}, {transform_indices = @transform_2, window_bounds = array<i64: 2, 8, 1>}, {pipeline_mode = #tpu.pipeline_mode<synchronous>, transform_indices = @transform_3, window_bounds = array<i64: 8, 8>}, {pipeline_mode = #tpu.pipeline_mode<synchronous>, transform_indices = @transform_4, window_bounds = array<i64: 8, 1>}, {pipeline_mode = #tpu.pipeline_mode<synchronous>, transform_indices = @transform_5, window_bounds = array<i64: 8, 1>}, {pipeline_mode = #tpu.pipeline_mode<synchronous>, transform_indices = @transform_6, window_bounds = array<i64: 1, 256>}, {transform_indices = @transform_7, window_bounds = array<i64: 2, 8, 256>}]} {
    %c0 = arith.constant 0 : index
    %c0_0 = arith.constant 0 : index
    %0 = vector.load %arg7[%c0, %c0_0] : memref<1x256xf32, #tpu.memory_space<vmem>>, vector<1x256xf32>
    %c0_1 = arith.constant 0 : index
    %c0_2 = arith.constant 0 : index
    %c0_3 = arith.constant 0 : index
    %1 = vector.load %arg1[%c0_1, %c0_2, %c0_3] : memref<2x8x384xbf16, #tpu.memory_space<vmem>>, vector<1x8x384xbf16>
    %2 = vector.shape_cast %1 : vector<1x8x384xbf16> to vector<8x384xbf16>
    %cst = arith.constant 0.000000e+00 : f32
    %3 = vector.broadcast %cst : f32 to vector<8x256xf32>
    %c0_4 = arith.constant 0 : index
    %c0_5 = arith.constant 0 : index
    %c0_6 = arith.constant 0 : index
    %4 = vector.load %arg2[%c0_4, %c0_5, %c0_6] : memref<9x8x8xbf16, #tpu.memory_space<vmem>>, vector<1x8x8xbf16>
    %5 = vector.shape_cast %4 : vector<1x8x8xbf16> to vector<8x8xbf16>
    %6 = vector.extract_strided_slice %2 {offsets = [0, 0], sizes = [8, 256], strides = [1, 1]} : vector<8x384xbf16> to vector<8x256xbf16>
    %cst_7 = arith.constant dense<0.000000e+00> : vector<8x256xf32>
    %7 = tpu.matmul %5, %6, %cst_7 {dimension_numbers = #tpu.dot_dimension_numbers<[1], [0], [0], [1], [0, 0, 1, 1], [], []>} : vector<8x8xbf16>, vector<8x256xbf16>, vector<8x256xf32> -> vector<8x256xf32>
    %8 = arith.addf %3, %7 : vector<8x256xf32>
    %c1 = arith.constant 1 : index
    %c0_8 = arith.constant 0 : index
    %c0_9 = arith.constant 0 : index
    %9 = vector.load %arg2[%c1, %c0_8, %c0_9] : memref<9x8x8xbf16, #tpu.memory_space<vmem>>, vector<1x8x8xbf16>
    %10 = vector.shape_cast %9 : vector<1x8x8xbf16> to vector<8x8xbf16>
    %11 = vector.extract_strided_slice %2 {offsets = [0, 1], sizes = [8, 256], strides = [1, 1]} : vector<8x384xbf16> to vector<8x256xbf16>
    %cst_10 = arith.constant dense<0.000000e+00> : vector<8x256xf32>
    %12 = tpu.matmul %10, %11, %cst_10 {dimension_numbers = #tpu.dot_dimension_numbers<[1], [0], [0], [1], [0, 0, 1, 1], [], []>} : vector<8x8xbf16>, vector<8x256xbf16>, vector<8x256xf32> -> vector<8x256xf32>
    %13 = arith.addf %8, %12 : vector<8x256xf32>
    %c2 = arith.constant 2 : index
    %c0_11 = arith.constant 0 : index
    %c0_12 = arith.constant 0 : index
    %14 = vector.load %arg2[%c2, %c0_11, %c0_12] : memref<9x8x8xbf16, #tpu.memory_space<vmem>>, vector<1x8x8xbf16>
    %15 = vector.shape_cast %14 : vector<1x8x8xbf16> to vector<8x8xbf16>
    %16 = vector.extract_strided_slice %2 {offsets = [0, 2], sizes = [8, 256], strides = [1, 1]} : vector<8x384xbf16> to vector<8x256xbf16>
    %cst_13 = arith.constant dense<0.000000e+00> : vector<8x256xf32>
    %17 = tpu.matmul %15, %16, %cst_13 {dimension_numbers = #tpu.dot_dimension_numbers<[1], [0], [0], [1], [0, 0, 1, 1], [], []>} : vector<8x8xbf16>, vector<8x256xbf16>, vector<8x256xf32> -> vector<8x256xf32>
    %18 = arith.addf %13, %17 : vector<8x256xf32>
    %c3 = arith.constant 3 : index
    %c0_14 = arith.constant 0 : index
    %c0_15 = arith.constant 0 : index
    %19 = vector.load %arg2[%c3, %c0_14, %c0_15] : memref<9x8x8xbf16, #tpu.memory_space<vmem>>, vector<1x8x8xbf16>
    %20 = vector.shape_cast %19 : vector<1x8x8xbf16> to vector<8x8xbf16>
    %21 = vector.extract_strided_slice %2 {offsets = [0, 16], sizes = [8, 256], strides = [1, 1]} : vector<8x384xbf16> to vector<8x256xbf16>
    %cst_16 = arith.constant dense<0.000000e+00> : vector<8x256xf32>
    %22 = tpu.matmul %20, %21, %cst_16 {dimension_numbers = #tpu.dot_dimension_numbers<[1], [0], [0], [1], [0, 0, 1, 1], [], []>} : vector<8x8xbf16>, vector<8x256xbf16>, vector<8x256xf32> -> vector<8x256xf32>
    %23 = arith.addf %18, %22 : vector<8x256xf32>
    %c4 = arith.constant 4 : index
    %c0_17 = arith.constant 0 : index
    %c0_18 = arith.constant 0 : index
    %24 = vector.load %arg2[%c4, %c0_17, %c0_18] : memref<9x8x8xbf16, #tpu.memory_space<vmem>>, vector<1x8x8xbf16>
    %25 = vector.shape_cast %24 : vector<1x8x8xbf16> to vector<8x8xbf16>
    %26 = vector.extract_strided_slice %2 {offsets = [0, 17], sizes = [8, 256], strides = [1, 1]} : vector<8x384xbf16> to vector<8x256xbf16>
    %cst_19 = arith.constant dense<0.000000e+00> : vector<8x256xf32>
    %27 = tpu.matmul %25, %26, %cst_19 {dimension_numbers = #tpu.dot_dimension_numbers<[1], [0], [0], [1], [0, 0, 1, 1], [], []>} : vector<8x8xbf16>, vector<8x256xbf16>, vector<8x256xf32> -> vector<8x256xf32>
    %28 = arith.addf %23, %27 : vector<8x256xf32>
    %c5 = arith.constant 5 : index
    %c0_20 = arith.constant 0 : index
    %c0_21 = arith.constant 0 : index
    %29 = vector.load %arg2[%c5, %c0_20, %c0_21] : memref<9x8x8xbf16, #tpu.memory_space<vmem>>, vector<1x8x8xbf16>
    %30 = vector.shape_cast %29 : vector<1x8x8xbf16> to vector<8x8xbf16>
    %31 = vector.extract_strided_slice %2 {offsets = [0, 18], sizes = [8, 256], strides = [1, 1]} : vector<8x384xbf16> to vector<8x256xbf16>
    %cst_22 = arith.constant dense<0.000000e+00> : vector<8x256xf32>
    %32 = tpu.matmul %30, %31, %cst_22 {dimension_numbers = #tpu.dot_dimension_numbers<[1], [0], [0], [1], [0, 0, 1, 1], [], []>} : vector<8x8xbf16>, vector<8x256xbf16>, vector<8x256xf32> -> vector<8x256xf32>
    %33 = arith.addf %28, %32 : vector<8x256xf32>
    %c6 = arith.constant 6 : index
    %c0_23 = arith.constant 0 : index
    %c0_24 = arith.constant 0 : index
    %34 = vector.load %arg2[%c6, %c0_23, %c0_24] : memref<9x8x8xbf16, #tpu.memory_space<vmem>>, vector<1x8x8xbf16>
    %35 = vector.shape_cast %34 : vector<1x8x8xbf16> to vector<8x8xbf16>
    %36 = vector.extract_strided_slice %2 {offsets = [0, 32], sizes = [8, 256], strides = [1, 1]} : vector<8x384xbf16> to vector<8x256xbf16>
    %cst_25 = arith.constant dense<0.000000e+00> : vector<8x256xf32>
    %37 = tpu.matmul %35, %36, %cst_25 {dimension_numbers = #tpu.dot_dimension_numbers<[1], [0], [0], [1], [0, 0, 1, 1], [], []>} : vector<8x8xbf16>, vector<8x256xbf16>, vector<8x256xf32> -> vector<8x256xf32>
    %38 = arith.addf %33, %37 : vector<8x256xf32>
    %c7 = arith.constant 7 : index
    %c0_26 = arith.constant 0 : index
    %c0_27 = arith.constant 0 : index
    %39 = vector.load %arg2[%c7, %c0_26, %c0_27] : memref<9x8x8xbf16, #tpu.memory_space<vmem>>, vector<1x8x8xbf16>
    %40 = vector.shape_cast %39 : vector<1x8x8xbf16> to vector<8x8xbf16>
    %41 = vector.extract_strided_slice %2 {offsets = [0, 33], sizes = [8, 256], strides = [1, 1]} : vector<8x384xbf16> to vector<8x256xbf16>
    %cst_28 = arith.constant dense<0.000000e+00> : vector<8x256xf32>
    %42 = tpu.matmul %40, %41, %cst_28 {dimension_numbers = #tpu.dot_dimension_numbers<[1], [0], [0], [1], [0, 0, 1, 1], [], []>} : vector<8x8xbf16>, vector<8x256xbf16>, vector<8x256xf32> -> vector<8x256xf32>
    %43 = arith.addf %38, %42 : vector<8x256xf32>
    %c8 = arith.constant 8 : index
    %c0_29 = arith.constant 0 : index
    %c0_30 = arith.constant 0 : index
    %44 = vector.load %arg2[%c8, %c0_29, %c0_30] : memref<9x8x8xbf16, #tpu.memory_space<vmem>>, vector<1x8x8xbf16>
    %45 = vector.shape_cast %44 : vector<1x8x8xbf16> to vector<8x8xbf16>
    %46 = vector.extract_strided_slice %2 {offsets = [0, 34], sizes = [8, 256], strides = [1, 1]} : vector<8x384xbf16> to vector<8x256xbf16>
    %cst_31 = arith.constant dense<0.000000e+00> : vector<8x256xf32>
    %47 = tpu.matmul %45, %46, %cst_31 {dimension_numbers = #tpu.dot_dimension_numbers<[1], [0], [0], [1], [0, 0, 1, 1], [], []>} : vector<8x8xbf16>, vector<8x256xbf16>, vector<8x256xf32> -> vector<8x256xf32>
    %48 = arith.addf %43, %47 : vector<8x256xf32>
    %c0_32 = arith.constant 0 : index
    %c0_33 = arith.constant 0 : index
    %c0_34 = arith.constant 0 : index
    %49 = vector.load %arg3[%c0_32, %c0_33, %c0_34] : memref<2x8x1xf32, #tpu.memory_space<vmem>>, vector<1x8x1xf32>
    %50 = vector.shape_cast %49 : vector<1x8x1xf32> to vector<8x1xf32>
    %51 = vector.broadcast %50 : vector<8x1xf32> to vector<8x256xf32>
    %52 = arith.addf %48, %51 : vector<8x256xf32>
    %53 = vector.broadcast %0 : vector<1x256xf32> to vector<8x256xf32>
    %54 = arith.mulf %52, %53 : vector<8x256xf32>
    %cst_35 = arith.constant dense<0.000000e+00> : vector<8xf32>
    %55 = vector.multi_reduction <add>, %54, %cst_35 [1] : vector<8x256xf32> to vector<8xf32>
    %56 = vector.shape_cast %55 : vector<8xf32> to vector<8x1xf32>
    %57 = arith.mulf %54, %52 : vector<8x256xf32>
    %cst_36 = arith.constant dense<0.000000e+00> : vector<8xf32>
    %58 = vector.multi_reduction <add>, %57, %cst_36 [1] : vector<8x256xf32> to vector<8xf32>
    %59 = vector.shape_cast %58 : vector<8xf32> to vector<8x1xf32>
    %c0_37 = arith.constant 0 : index
    %c0_38 = arith.constant 0 : index
    %60 = vector.load %arg4[%c0_37, %c0_38] : memref<8x8xf32, #tpu.memory_space<vmem>>, vector<8x8xf32>
    %cst_39 = arith.constant dense<0.000000e+00> : vector<8x1xf32>
    %61 = tpu.matmul %60, %56, %cst_39 {dimension_numbers = #tpu.dot_dimension_numbers<[1], [0], [0], [1], [0, 0, 1, 1], [], []>} : vector<8x8xf32>, vector<8x1xf32>, vector<8x1xf32> -> vector<8x1xf32>
    %c0_40 = arith.constant 0 : index
    %c0_41 = arith.constant 0 : index
    %62 = vector.load %arg4[%c0_40, %c0_41] : memref<8x8xf32, #tpu.memory_space<vmem>>, vector<8x8xf32>
    %cst_42 = arith.constant dense<0.000000e+00> : vector<8x1xf32>
    %63 = tpu.matmul %62, %59, %cst_42 {dimension_numbers = #tpu.dot_dimension_numbers<[1], [0], [0], [1], [0, 0, 1, 1], [], []>} : vector<8x8xf32>, vector<8x1xf32>, vector<8x1xf32> -> vector<8x1xf32>
    %64 = arith.mulf %61, %61 : vector<8x1xf32>
    %65 = arith.subf %63, %64 : vector<8x1xf32>
    %cst_43 = arith.constant 9.99999997E-7 : f32
    %66 = vector.broadcast %cst_43 : f32 to vector<8x1xf32>
    %67 = arith.addf %65, %66 : vector<8x1xf32>
    %68 = math.rsqrt %67 : vector<8x1xf32>
    %c0_44 = arith.constant 0 : index
    %c0_45 = arith.constant 0 : index
    %69 = vector.load %arg5[%c0_44, %c0_45] : memref<8x1xf32, #tpu.memory_space<vmem>>, vector<8x1xf32>
    %70 = arith.mulf %68, %69 : vector<8x1xf32>
    %c0_46 = arith.constant 0 : index
    %c0_47 = arith.constant 0 : index
    %71 = vector.load %arg6[%c0_46, %c0_47] : memref<8x1xf32, #tpu.memory_space<vmem>>, vector<8x1xf32>
    %72 = arith.mulf %61, %70 : vector<8x1xf32>
    %73 = arith.subf %71, %72 : vector<8x1xf32>
    %74 = vector.broadcast %70 : vector<8x1xf32> to vector<8x256xf32>
    %75 = arith.mulf %52, %74 : vector<8x256xf32>
    %76 = vector.broadcast %73 : vector<8x1xf32> to vector<8x256xf32>
    %77 = arith.addf %75, %76 : vector<8x256xf32>
    %78 = arith.negf %77 : vector<8x256xf32>
    %79 = math.exp %78 : vector<8x256xf32>
    %cst_48 = arith.constant 1.000000e+00 : f32
    %80 = vector.broadcast %cst_48 : f32 to vector<8x256xf32>
    %81 = arith.addf %80, %79 : vector<8x256xf32>
    %82 = arith.divf %80, %81 : vector<8x256xf32>
    %83 = arith.mulf %77, %82 : vector<8x256xf32>
    %c0_49 = arith.constant 0 : index
    %c0_50 = arith.constant 0 : index
    %c0_51 = arith.constant 0 : index
    %84 = vector.load %arg8[%c0_49, %c0_50, %c0_51] : memref<2x8x256xf32, #tpu.memory_space<vmem>>, vector<1x8x256xf32>
    %85 = vector.shape_cast %84 : vector<1x8x256xf32> to vector<8x256xf32>
    %86 = vector.shape_cast %83 : vector<8x256xf32> to vector<1x8x256xf32>
    tpu.vector_store %arg8[%c0_49, %c0_50, %c0_51], %86 {strides = array<i32>} : memref<2x8x256xf32, #tpu.memory_space<vmem>>, vector<1x8x256xf32>,
    %c1_52 = arith.constant 1 : index
    %c0_53 = arith.constant 0 : index
    %c0_54 = arith.constant 0 : index
    %87 = vector.load %arg1[%c1_52, %c0_53, %c0_54] : memref<2x8x384xbf16, #tpu.memory_space<vmem>>, vector<1x8x384xbf16>
    %88 = vector.shape_cast %87 : vector<1x8x384xbf16> to vector<8x384xbf16>
    %cst_55 = arith.constant 0.000000e+00 : f32
    %89 = vector.broadcast %cst_55 : f32 to vector<8x256xf32>
    %c0_56 = arith.constant 0 : index
    %c0_57 = arith.constant 0 : index
    %c0_58 = arith.constant 0 : index
    %90 = vector.load %arg2[%c0_56, %c0_57, %c0_58] : memref<9x8x8xbf16, #tpu.memory_space<vmem>>, vector<1x8x8xbf16>
    %91 = vector.shape_cast %90 : vector<1x8x8xbf16> to vector<8x8xbf16>
    %92 = vector.extract_strided_slice %88 {offsets = [0, 0], sizes = [8, 256], strides = [1, 1]} : vector<8x384xbf16> to vector<8x256xbf16>
    %cst_59 = arith.constant dense<0.000000e+00> : vector<8x256xf32>
    %93 = tpu.matmul %91, %92, %cst_59 {dimension_numbers = #tpu.dot_dimension_numbers<[1], [0], [0], [1], [0, 0, 1, 1], [], []>} : vector<8x8xbf16>, vector<8x256xbf16>, vector<8x256xf32> -> vector<8x256xf32>
    %94 = arith.addf %89, %93 : vector<8x256xf32>
    %c1_60 = arith.constant 1 : index
    %c0_61 = arith.constant 0 : index
    %c0_62 = arith.constant 0 : index
    %95 = vector.load %arg2[%c1_60, %c0_61, %c0_62] : memref<9x8x8xbf16, #tpu.memory_space<vmem>>, vector<1x8x8xbf16>
    %96 = vector.shape_cast %95 : vector<1x8x8xbf16> to vector<8x8xbf16>
    %97 = vector.extract_strided_slice %88 {offsets = [0, 1], sizes = [8, 256], strides = [1, 1]} : vector<8x384xbf16> to vector<8x256xbf16>
    %cst_63 = arith.constant dense<0.000000e+00> : vector<8x256xf32>
    %98 = tpu.matmul %96, %97, %cst_63 {dimension_numbers = #tpu.dot_dimension_numbers<[1], [0], [0], [1], [0, 0, 1, 1], [], []>} : vector<8x8xbf16>, vector<8x256xbf16>, vector<8x256xf32> -> vector<8x256xf32>
    %99 = arith.addf %94, %98 : vector<8x256xf32>
    %c2_64 = arith.constant 2 : index
    %c0_65 = arith.constant 0 : index
    %c0_66 = arith.constant 0 : index
    %100 = vector.load %arg2[%c2_64, %c0_65, %c0_66] : memref<9x8x8xbf16, #tpu.memory_space<vmem>>, vector<1x8x8xbf16>
    %101 = vector.shape_cast %100 : vector<1x8x8xbf16> to vector<8x8xbf16>
    %102 = vector.extract_strided_slice %88 {offsets = [0, 2], sizes = [8, 256], strides = [1, 1]} : vector<8x384xbf16> to vector<8x256xbf16>
    %cst_67 = arith.constant dense<0.000000e+00> : vector<8x256xf32>
    %103 = tpu.matmul %101, %102, %cst_67 {dimension_numbers = #tpu.dot_dimension_numbers<[1], [0], [0], [1], [0, 0, 1, 1], [], []>} : vector<8x8xbf16>, vector<8x256xbf16>, vector<8x256xf32> -> vector<8x256xf32>
    %104 = arith.addf %99, %103 : vector<8x256xf32>
    %c3_68 = arith.constant 3 : index
    %c0_69 = arith.constant 0 : index
    %c0_70 = arith.constant 0 : index
    %105 = vector.load %arg2[%c3_68, %c0_69, %c0_70] : memref<9x8x8xbf16, #tpu.memory_space<vmem>>, vector<1x8x8xbf16>
    %106 = vector.shape_cast %105 : vector<1x8x8xbf16> to vector<8x8xbf16>
    %107 = vector.extract_strided_slice %88 {offsets = [0, 16], sizes = [8, 256], strides = [1, 1]} : vector<8x384xbf16> to vector<8x256xbf16>
    %cst_71 = arith.constant dense<0.000000e+00> : vector<8x256xf32>
    %108 = tpu.matmul %106, %107, %cst_71 {dimension_numbers = #tpu.dot_dimension_numbers<[1], [0], [0], [1], [0, 0, 1, 1], [], []>} : vector<8x8xbf16>, vector<8x256xbf16>, vector<8x256xf32> -> vector<8x256xf32>
    %109 = arith.addf %104, %108 : vector<8x256xf32>
    %c4_72 = arith.constant 4 : index
    %c0_73 = arith.constant 0 : index
    %c0_74 = arith.constant 0 : index
    %110 = vector.load %arg2[%c4_72, %c0_73, %c0_74] : memref<9x8x8xbf16, #tpu.memory_space<vmem>>, vector<1x8x8xbf16>
    %111 = vector.shape_cast %110 : vector<1x8x8xbf16> to vector<8x8xbf16>
    %112 = vector.extract_strided_slice %88 {offsets = [0, 17], sizes = [8, 256], strides = [1, 1]} : vector<8x384xbf16> to vector<8x256xbf16>
    %cst_75 = arith.constant dense<0.000000e+00> : vector<8x256xf32>
    %113 = tpu.matmul %111, %112, %cst_75 {dimension_numbers = #tpu.dot_dimension_numbers<[1], [0], [0], [1], [0, 0, 1, 1], [], []>} : vector<8x8xbf16>, vector<8x256xbf16>, vector<8x256xf32> -> vector<8x256xf32>
    %114 = arith.addf %109, %113 : vector<8x256xf32>
    %c5_76 = arith.constant 5 : index
    %c0_77 = arith.constant 0 : index
    %c0_78 = arith.constant 0 : index
    %115 = vector.load %arg2[%c5_76, %c0_77, %c0_78] : memref<9x8x8xbf16, #tpu.memory_space<vmem>>, vector<1x8x8xbf16>
    %116 = vector.shape_cast %115 : vector<1x8x8xbf16> to vector<8x8xbf16>
    %117 = vector.extract_strided_slice %88 {offsets = [0, 18], sizes = [8, 256], strides = [1, 1]} : vector<8x384xbf16> to vector<8x256xbf16>
    %cst_79 = arith.constant dense<0.000000e+00> : vector<8x256xf32>
    %118 = tpu.matmul %116, %117, %cst_79 {dimension_numbers = #tpu.dot_dimension_numbers<[1], [0], [0], [1], [0, 0, 1, 1], [], []>} : vector<8x8xbf16>, vector<8x256xbf16>, vector<8x256xf32> -> vector<8x256xf32>
    %119 = arith.addf %114, %118 : vector<8x256xf32>
    %c6_80 = arith.constant 6 : index
    %c0_81 = arith.constant 0 : index
    %c0_82 = arith.constant 0 : index
    %120 = vector.load %arg2[%c6_80, %c0_81, %c0_82] : memref<9x8x8xbf16, #tpu.memory_space<vmem>>, vector<1x8x8xbf16>
    %121 = vector.shape_cast %120 : vector<1x8x8xbf16> to vector<8x8xbf16>
    %122 = vector.extract_strided_slice %88 {offsets = [0, 32], sizes = [8, 256], strides = [1, 1]} : vector<8x384xbf16> to vector<8x256xbf16>
    %cst_83 = arith.constant dense<0.000000e+00> : vector<8x256xf32>
    %123 = tpu.matmul %121, %122, %cst_83 {dimension_numbers = #tpu.dot_dimension_numbers<[1], [0], [0], [1], [0, 0, 1, 1], [], []>} : vector<8x8xbf16>, vector<8x256xbf16>, vector<8x256xf32> -> vector<8x256xf32>
    %124 = arith.addf %119, %123 : vector<8x256xf32>
    %c7_84 = arith.constant 7 : index
    %c0_85 = arith.constant 0 : index
    %c0_86 = arith.constant 0 : index
    %125 = vector.load %arg2[%c7_84, %c0_85, %c0_86] : memref<9x8x8xbf16, #tpu.memory_space<vmem>>, vector<1x8x8xbf16>
    %126 = vector.shape_cast %125 : vector<1x8x8xbf16> to vector<8x8xbf16>
    %127 = vector.extract_strided_slice %88 {offsets = [0, 33], sizes = [8, 256], strides = [1, 1]} : vector<8x384xbf16> to vector<8x256xbf16>
    %cst_87 = arith.constant dense<0.000000e+00> : vector<8x256xf32>
    %128 = tpu.matmul %126, %127, %cst_87 {dimension_numbers = #tpu.dot_dimension_numbers<[1], [0], [0], [1], [0, 0, 1, 1], [], []>} : vector<8x8xbf16>, vector<8x256xbf16>, vector<8x256xf32> -> vector<8x256xf32>
    %129 = arith.addf %124, %128 : vector<8x256xf32>
    %c8_88 = arith.constant 8 : index
    %c0_89 = arith.constant 0 : index
    %c0_90 = arith.constant 0 : index
    %130 = vector.load %arg2[%c8_88, %c0_89, %c0_90] : memref<9x8x8xbf16, #tpu.memory_space<vmem>>, vector<1x8x8xbf16>
    %131 = vector.shape_cast %130 : vector<1x8x8xbf16> to vector<8x8xbf16>
    %132 = vector.extract_strided_slice %88 {offsets = [0, 34], sizes = [8, 256], strides = [1, 1]} : vector<8x384xbf16> to vector<8x256xbf16>
    %cst_91 = arith.constant dense<0.000000e+00> : vector<8x256xf32>
    %133 = tpu.matmul %131, %132, %cst_91 {dimension_numbers = #tpu.dot_dimension_numbers<[1], [0], [0], [1], [0, 0, 1, 1], [], []>} : vector<8x8xbf16>, vector<8x256xbf16>, vector<8x256xf32> -> vector<8x256xf32>
    %134 = arith.addf %129, %133 : vector<8x256xf32>
    %c1_92 = arith.constant 1 : index
    %c0_93 = arith.constant 0 : index
    %c0_94 = arith.constant 0 : index
    %135 = vector.load %arg3[%c1_92, %c0_93, %c0_94] : memref<2x8x1xf32, #tpu.memory_space<vmem>>, vector<1x8x1xf32>
    %136 = vector.shape_cast %135 : vector<1x8x1xf32> to vector<8x1xf32>
    %137 = vector.broadcast %136 : vector<8x1xf32> to vector<8x256xf32>
    %138 = arith.addf %134, %137 : vector<8x256xf32>
    %139 = vector.broadcast %0 : vector<1x256xf32> to vector<8x256xf32>
    %140 = arith.mulf %138, %139 : vector<8x256xf32>
    %cst_95 = arith.constant dense<0.000000e+00> : vector<8xf32>
    %141 = vector.multi_reduction <add>, %140, %cst_95 [1] : vector<8x256xf32> to vector<8xf32>
    %142 = vector.shape_cast %141 : vector<8xf32> to vector<8x1xf32>
    %143 = arith.mulf %140, %138 : vector<8x256xf32>
    %cst_96 = arith.constant dense<0.000000e+00> : vector<8xf32>
    %144 = vector.multi_reduction <add>, %143, %cst_96 [1] : vector<8x256xf32> to vector<8xf32>
    %145 = vector.shape_cast %144 : vector<8xf32> to vector<8x1xf32>
    %c0_97 = arith.constant 0 : index
    %c0_98 = arith.constant 0 : index
    %146 = vector.load %arg4[%c0_97, %c0_98] : memref<8x8xf32, #tpu.memory_space<vmem>>, vector<8x8xf32>
    %cst_99 = arith.constant dense<0.000000e+00> : vector<8x1xf32>
    %147 = tpu.matmul %146, %142, %cst_99 {dimension_numbers = #tpu.dot_dimension_numbers<[1], [0], [0], [1], [0, 0, 1, 1], [], []>} : vector<8x8xf32>, vector<8x1xf32>, vector<8x1xf32> -> vector<8x1xf32>
    %c0_100 = arith.constant 0 : index
    %c0_101 = arith.constant 0 : index
    %148 = vector.load %arg4[%c0_100, %c0_101] : memref<8x8xf32, #tpu.memory_space<vmem>>, vector<8x8xf32>
    %cst_102 = arith.constant dense<0.000000e+00> : vector<8x1xf32>
    %149 = tpu.matmul %148, %145, %cst_102 {dimension_numbers = #tpu.dot_dimension_numbers<[1], [0], [0], [1], [0, 0, 1, 1], [], []>} : vector<8x8xf32>, vector<8x1xf32>, vector<8x1xf32> -> vector<8x1xf32>
    %150 = arith.mulf %147, %147 : vector<8x1xf32>
    %151 = arith.subf %149, %150 : vector<8x1xf32>
    %cst_103 = arith.constant 9.99999997E-7 : f32
    %152 = vector.broadcast %cst_103 : f32 to vector<8x1xf32>
    %153 = arith.addf %151, %152 : vector<8x1xf32>
    %154 = math.rsqrt %153 : vector<8x1xf32>
    %c0_104 = arith.constant 0 : index
    %c0_105 = arith.constant 0 : index
    %155 = vector.load %arg5[%c0_104, %c0_105] : memref<8x1xf32, #tpu.memory_space<vmem>>, vector<8x1xf32>
    %156 = arith.mulf %154, %155 : vector<8x1xf32>
    %c0_106 = arith.constant 0 : index
    %c0_107 = arith.constant 0 : index
    %157 = vector.load %arg6[%c0_106, %c0_107] : memref<8x1xf32, #tpu.memory_space<vmem>>, vector<8x1xf32>
    %158 = arith.mulf %147, %156 : vector<8x1xf32>
    %159 = arith.subf %157, %158 : vector<8x1xf32>
    %160 = vector.broadcast %156 : vector<8x1xf32> to vector<8x256xf32>
    %161 = arith.mulf %138, %160 : vector<8x256xf32>
    %162 = vector.broadcast %159 : vector<8x1xf32> to vector<8x256xf32>
    %163 = arith.addf %161, %162 : vector<8x256xf32>
    %164 = arith.negf %163 : vector<8x256xf32>
    %165 = math.exp %164 : vector<8x256xf32>
    %cst_108 = arith.constant 1.000000e+00 : f32
    %166 = vector.broadcast %cst_108 : f32 to vector<8x256xf32>
    %167 = arith.addf %166, %165 : vector<8x256xf32>
    %168 = arith.divf %166, %167 : vector<8x256xf32>
    %169 = arith.mulf %163, %168 : vector<8x256xf32>
    %c1_109 = arith.constant 1 : index
    %c0_110 = arith.constant 0 : index
    %c0_111 = arith.constant 0 : index
    %170 = vector.load %arg8[%c1_109, %c0_110, %c0_111] : memref<2x8x256xf32, #tpu.memory_space<vmem>>, vector<1x8x256xf32>
    %171 = vector.shape_cast %170 : vector<1x8x256xf32> to vector<8x256xf32>
    %172 = vector.shape_cast %169 : vector<8x256xf32> to vector<1x8x256xf32>
    tpu.vector_store %arg8[%c1_109, %c0_110, %c0_111], %172 {strides = array<i32>} : memref<2x8x256xf32, #tpu.memory_space<vmem>>, vector<1x8x256xf32>,
    return
  }
  func.func @transform_0(%arg0: i32) -> (i32, i32, i32) {
    %c0_i32 = arith.constant 0 : i32
    %c0_i32_0 = arith.constant 0 : i32
    %c0_i32_1 = arith.constant 0 : i32
    return %arg0, %c0_i32, %c0_i32_0 : i32, i32, i32
  }
  func.func @transform_1(%arg0: i32) -> (i32, i32, i32) {
    %c0_i32 = arith.constant 0 : i32
    %c0_i32_0 = arith.constant 0 : i32
    %c0_i32_1 = arith.constant 0 : i32
    %c0_i32_2 = arith.constant 0 : i32
    return %c0_i32, %c0_i32_0, %c0_i32_1 : i32, i32, i32
  }
  func.func @transform_2(%arg0: i32) -> (i32, i32, i32) {
    %c0_i32 = arith.constant 0 : i32
    %c0_i32_0 = arith.constant 0 : i32
    %c0_i32_1 = arith.constant 0 : i32
    return %arg0, %c0_i32, %c0_i32_0 : i32, i32, i32
  }
  func.func @transform_3(%arg0: i32) -> (i32, i32) {
    %c0_i32 = arith.constant 0 : i32
    %c0_i32_0 = arith.constant 0 : i32
    %c0_i32_1 = arith.constant 0 : i32
    return %c0_i32, %c0_i32_0 : i32, i32
  }
  func.func @transform_4(%arg0: i32) -> (i32, i32) {
    %c0_i32 = arith.constant 0 : i32
    %c0_i32_0 = arith.constant 0 : i32
    %c0_i32_1 = arith.constant 0 : i32
    return %c0_i32, %c0_i32_0 : i32, i32
  }
  func.func @transform_5(%arg0: i32) -> (i32, i32) {
    %c0_i32 = arith.constant 0 : i32
    %c0_i32_0 = arith.constant 0 : i32
    %c0_i32_1 = arith.constant 0 : i32
    return %c0_i32, %c0_i32_0 : i32, i32
  }
  func.func @transform_6(%arg0: i32) -> (i32, i32) {
    %c0_i32 = arith.constant 0 : i32
    %c0_i32_0 = arith.constant 0 : i32
    %c0_i32_1 = arith.constant 0 : i32
    return %c0_i32, %c0_i32_0 : i32, i32
  }
  func.func @transform_7(%arg0: i32) -> (i32, i32, i32) {
    %c0_i32 = arith.constant 0 : i32
    %c0_i32_0 = arith.constant 0 : i32
    %c0_i32_1 = arith.constant 0 : i32
    return %arg0, %c0_i32, %c0_i32_0 : i32, i32, i32
  }
}

</mosaic_0001>

<bundles_post_ra>
// kernel: midblock_t_forward.1
= control target key start
LH: loop header
LB: loop body
LE: loop exit
PB: predicated region body
PF: predicated region fallthrough
CT: control target
= control target key end

     0   :  { %v1698_v1 = vmov 0   ;;  %s1699_s28 = smov 127   ;;  %vm54_vm0 = vcmask 1043456   ;;  %s1700_s8 = smov 126   ;;  %vm50_vm1 = vcmask 64512   ;;  %vm47_vm2 = vcmask 1039360   ;;  %s2084_s0 = inlined_call_operand.vmem [shape: bf16[2,8,384], index: 0, kind: input, shape index: {}]   ;;  %s2085_s1 = inlined_call_operand.vmem [shape: bf16[9,8,8], index: 1, kind: input, shape index: {}]   ;;  %s2086_s2 = inlined_call_operand.vmem [shape: f32[2,8,1], index: 2, kind: input, shape index: {}]   ;;  %s2087_s6 = inlined_call_operand.vmem [shape: f32[1,256], index: 6, kind: input, shape index: {}]   ;;  %s2088_s3 = inlined_call_operand.vmem [shape: f32[8,8], index: 3, kind: input, shape index: {}]   ;;  %s2089_s4 = inlined_call_operand.vmem [shape: f32[8,1], index: 4, kind: input, shape index: {}]   ;;  %s2090_s5 = inlined_call_operand.vmem [shape: f32[8,1], index: 5, kind: input, shape index: {}]   ;;  %s2091_s7 = inlined_call_operand.vmem [shape: f32[2,8,256], index: 7, kind: output, shape index: {}]  }
   0x1   :  { %v1672_v0 = vld [vmem:[%s2084_s0 + $0x8] ss:$0 sps:$4 sm:$0xff]   ;;  %93 = vmatprep.mubr.bf16.mxu0 %v1698_v1  ;;  %143 = vmatprep.mubr.bf16.mxu1 %v1698_v1  ;;  %v28_v2 = vld [vmem:[%s2084_s0] sm:$0xff]  ;;  %s1701_s9 = smov 112   ;;  %s1702_s10 = smov 111   ;;  %v1593_v7 = vld [vmem:[%s2084_s0 + $0xc] sm:$0xff] }
   0x2   :  { %1670 = vset.pattern.permute.xlu0 %v1698_v1  ;;  %1671 = vset.pattern.permute.xlu1 %v1698_v1  ;;  %v1561_v3 = vcombine.low %v28_v2, %v28_v2  ;;  %v1562_v4 = vcombine.high %v28_v2, %v28_v2  ;;  %v30_v6 = vld [vmem:[%s2085_s1] sm:$0xf]  ;;  %s1703_s11 = smov 110   ;;  %s1704_s12 = smov 96   ;;  %v1792_v8 = vcombine.low %v1593_v7, %v1593_v7  ;;  %v1803_v10 = vld [vmem:[%s2084_s0 + $0x14] ss:$0 sps:$4 sm:$0xff]  }
   0x3   :  { %45 = vrot.lane.b32.xlu1 %v1672_v0, %s1699_s28  ;;  %s1705_s13 = smov 95   ;;  %s1706_s14 = smov 94   ;;  %v593_v9 = vld [vmem:[%s2086_s2] sm:$0xff]  ;;  %v1805_v11 = vcombine.high %v1593_v7, %v1593_v7  ;;  %vm160_vm3 = vcmask 1031168   ;;  %vm223_vm4 = vcmask 916480   ;;  %vm286_vm5 = vcmask 908288  }
   0x4   :  { %41 = vrot.lane.b32.xlu0 %v1561_v3, %s1699_s28  ;;  %1566 = vmatprep.subr.msk.bf16.mxu1 %vm54_vm0, %v1562_v4  ;;  %v106_v5 = vsel %vm54_vm0, %v1561_v3, 0  ;;  %v1560_v20 = vld [vmem:[%s2085_s1 + $0x4] sm:$0xf]  ;;  %v1568_v29 = vld [vmem:[%s2085_s1 + $0x8] sm:$0xf]  ;;  %vm349_vm6 = vcmask 900096  }
   0x5   :  { %112 = vmatpush1.bf16.msra.mxu1 %v106_v5  ;;  %v1571_v34 = vld [vmem:[%s2085_s1 + $0xc] sm:$0xf]  ;;  %v1574_v40 = vld [vmem:[%s2085_s1 + $0x10] sm:$0xf]  ;;  %vm412_vm7 = vcmask 785408   ;;  %vm475_vm8 = vcmask 777216  }
   0x6   :  { %v1577_v48 = vld [vmem:[%s2085_s1 + $0x14] sm:$0xf]  ;;  %v1580_v54 = vld [vmem:[%s2085_s1 + $0x18] sm:$0xf]  ;;  %vm538_vm9 = vcmask 769024   ;;  %vm1708_vm10 = vmmov 0  }
   0x7   :  { %154 = vrot.lane.b32.xlu1 %v1561_v3, %s1700_s8  ;;  %v1583_v62 = vld [vmem:[%s2085_s1 + $0x1c] sm:$0xf] }
   0x8   :  { %43 = vrot.lane.b32.xlu0 %v1562_v4, %s1699_s28  ;;  %1567 = vmatmul.mubr.msk.bf16.vlgmr.msra.gmra.mrb[0].mxu1 %vm50_vm1, %v30_v6 }
   0x9   :  { %267 = vmatprep.mubr.bf16.mxu1 %v1698_v1 }
   0xb   :  { %158 = vrot.lane.b32.xlu1 %v1672_v0, %s1700_s8 }
   0xc   :  { %156 = vrot.lane.b32.xlu0 %v1562_v4, %s1700_s8 }
   0xf   :  { %219 = vrot.lane.b32.xlu1 %v1562_v4, %s1701_s9 }
  0x10   :  { %217 = vrot.lane.b32.xlu0 %v1561_v3, %s1701_s9 }
  0x13   :  { %280 = vrot.lane.b32.xlu1 %v1561_v3, %s1702_s10 }
  0x14   :  { %221 = vrot.lane.b32.xlu0 %v1672_v0, %s1701_s9 }
  0x17   :  { %284 = vrot.lane.b32.xlu1 %v1672_v0, %s1702_s10 }
  0x18   :  { %282 = vrot.lane.b32.xlu0 %v1562_v4, %s1702_s10 }
  0x1b   :  { %345 = vrot.lane.b32.xlu1 %v1562_v4, %s1703_s11 }
  0x1c   :  { %343 = vrot.lane.b32.xlu0 %v1561_v3, %s1703_s11 }
  0x1f   :  { %406 = vrot.lane.b32.xlu1 %v1561_v3, %s1704_s12 }
  0x20   :  { %347 = vrot.lane.b32.xlu0 %v1672_v0, %s1703_s11 }
  0x23   :  { %410 = vrot.lane.b32.xlu1 %v1672_v0, %s1704_s12 }
  0x24   :  { %408 = vrot.lane.b32.xlu0 %v1562_v4, %s1704_s12 }
  0x27   :  { %471 = vrot.lane.b32.xlu1 %v1562_v4, %s1705_s13 }
  0x28   :  { %469 = vrot.lane.b32.xlu0 %v1561_v3, %s1705_s13 }
  0x2b   :  { %532 = vrot.lane.b32.xlu1 %v1561_v3, %s1706_s14 }
  0x2c   :  { %473 = vrot.lane.b32.xlu0 %v1672_v0, %s1705_s13 }
  0x2f   :  { %536 = vrot.lane.b32.xlu1 %v1672_v0, %s1706_s14 }
  0x30   :  { %534 = vrot.lane.b32.xlu0 %v1562_v4, %s1706_s14  ;;  %v1586_v4 = vld [vmem:[%s2085_s1 + $0x20] sm:$0xf] }
  0x33   :  { %818 = vrot.lane.b32.xlu1 %v1792_v8, %s1699_s28 }
  0x34   :  { %596 = vperm.xlu0 %1670, %v593_v9  }
  0x37   :  { %822 = vrot.lane.b32.xlu1 %v1803_v10, %s1699_s28 }
  0x38   :  { %820 = vrot.lane.b32.xlu0 %v1805_v11, %s1699_s28 }
  0x3b   :  { %927 = vrot.lane.b32.xlu1 %v1792_v8, %s1700_s8 }
  0x3c   :  { %929 = vrot.lane.b32.xlu0 %v1805_v11, %s1700_s8 }
  0x3f   :  { %931 = vrot.lane.b32.xlu1 %v1803_v10, %s1700_s8 }
  0x40   :  { %988 = vrot.lane.b32.xlu0 %v1792_v8, %s1701_s9 }
  0x43   :  { %990 = vrot.lane.b32.xlu1 %v1805_v11, %s1701_s9 }
  0x44   :  { %992 = vrot.lane.b32.xlu0 %v1803_v10, %s1701_s9 }
  0x47   :  { %1049 = vrot.lane.b32.xlu1 %v1792_v8, %s1702_s10 }
  0x48   :  { %1051 = vrot.lane.b32.xlu0 %v1805_v11, %s1702_s10 }
  0x4b   :  { %1053 = vrot.lane.b32.xlu1 %v1803_v10, %s1702_s10 }
  0x4c   :  { %1110 = vrot.lane.b32.xlu0 %v1792_v8, %s1703_s11 }
  0x4f   :  { %1112 = vrot.lane.b32.xlu1 %v1805_v11, %s1703_s11 }
  0x50   :  { %1114 = vrot.lane.b32.xlu0 %v1803_v10, %s1703_s11 }
  0x53   :  { %1171 = vrot.lane.b32.xlu1 %v1792_v8, %s1704_s12 }
  0x75   :  { %v46_v12 = vpop.permute.xlu1 %45 }
  0x76   :  { %v42_v13 = vpop.permute.xlu0 %41 }
  0x79   :  { %v155_v14 = vpop.permute.xlu1 %154 }
  0x7a   :  { %v44_v15 = vpop.permute.xlu0 %43 }
  0x7b   :  { %v49_v16 = vsel %vm47_vm2, %v44_v15, %v46_v12  ;;  %v48_v17 = vsel %vm47_vm2, %v42_v13, %v44_v15 }
  0x7c   :  { %1564 = vmatprep.subr.msk.bf16.mxu0 %vm54_vm0, %v49_v16  ;;  %v56_v18 = vsel %vm54_vm0, %v48_v17, 0  ;;  %v1707_v16 = vmov 0.0  }
  0x7d   :  { %v159_v19 = vpop.permute.xlu1 %158  ;;  %62 = vmatpush1.bf16.msra.mxu0 %v56_v18 }
  0x7e   :  { %v157_v21 = vpop.permute.xlu0 %156 }
  0x7f   :  { %v161_v22 = vsel %vm160_vm3, %v155_v14, %v157_v21  ;;  %v162_v23 = vsel %vm160_vm3, %v157_v21, %v159_v19  ;;  %v1595_v21 = vld [vmem:[%s2085_s1 + $0x4] sm:$0xf] }
  0x80   :  { %v167_v24 = vsel %vm54_vm0, %v161_v22, 0  ;;  %1565 = vmatmul.mubr.msk.bf16.vlgmr.msra.gmra.mrb[0].mxu0 %vm50_vm1, %v1560_v20  ;;  %1569 = vmatprep.subr.msk.bf16.mxu0 %vm54_vm0, %v162_v23 }
  0x81   :  { %v220_v25 = vpop.permute.xlu1 %219  ;;  %173 = vmatpush1.bf16.msra.mxu0 %v167_v24  ;;  %204 = vmatprep.mubr.bf16.mxu0 %v1698_v1 }
  0x82   :  { %v218_v26 = vpop.permute.xlu0 %217 }
  0x83   :  { %v224_v28 = vsel %vm223_vm4, %v218_v26, %v220_v25 }
  0x84   :  { %v230_v32 = vsel %vm54_vm0, %v224_v28, 0 }
  0x85   :  { %v281_v27 = vpop.permute.xlu1 %280 }
  0x86   :  { %v222_v30 = vpop.permute.xlu0 %221 }
  0x87   :  { %v225_v31 = vsel %vm223_vm4, %v220_v25, %v222_v30 }
  0x88   :  { %1570 = vmatmul.mubr.msk.bf16.vlgmr.msra.gmra.mrb[4].mxu0 %vm50_vm1, %v1568_v29  ;;  %1572 = vmatprep.subr.msk.bf16.mxu1 %vm54_vm0, %v225_v31  ;;  %v1603_v29 = vld [vmem:[%s2085_s1 + $0x8] sm:$0xf] }
  0x89   :  { %v285_v33 = vpop.permute.xlu1 %284  ;;  %236 = vmatpush1.bf16.msra.mxu1 %v230_v32  ;;  %330 = vmatprep.mubr.bf16.mxu0 %v1698_v1 }
  0x8a   :  { %v283_v35 = vpop.permute.xlu0 %282 }
  0x8b   :  { %v287_v36 = vsel %vm286_vm5, %v281_v27, %v283_v35  ;;  %v288_v37 = vsel %vm286_vm5, %v283_v35, %v285_v33 }
  0x8c   :  { %v293_v38 = vsel %vm54_vm0, %v287_v36, 0  ;;  %1573 = vmatmul.mubr.msk.bf16.vlgmr.msra.gmra.mrb[4].mxu1 %vm50_vm1, %v1571_v34  ;;  %1575 = vmatprep.subr.msk.bf16.mxu0 %vm54_vm0, %v288_v37 }
  0x8d   :  { %v346_v39 = vpop.permute.xlu1 %345  ;;  %299 = vmatpush1.bf16.msra.mxu0 %v293_v38  ;;  %393 = vmatprep.mubr.bf16.mxu1 %v1698_v1 }
  0x8e   :  { %v344_v41 = vpop.permute.xlu0 %343 }
  0x8f   :  { %v350_v43 = vsel %vm349_vm6, %v344_v41, %v346_v39 }
  0x90   :  { %1576 = vmatmul.mubr.msk.bf16.vlgmr.msra.gmra.mrb[8].mxu0 %vm50_vm1, %v1574_v40  ;;  %v356_v46 = vsel %vm54_vm0, %v350_v43, 0 }
  0x91   :  { %v407_v42 = vpop.permute.xlu1 %406  ;;  %456 = vmatprep.mubr.bf16.mxu0 %v1698_v1 }
  0x92   :  { %v348_v44 = vpop.permute.xlu0 %347 }
  0x93   :  { %v351_v45 = vsel %vm349_vm6, %v346_v39, %v348_v44 }
  0x94   :  { %1578 = vmatprep.subr.msk.bf16.mxu1 %vm54_vm0, %v351_v45 }
  0x95   :  { %v411_v47 = vpop.permute.xlu1 %410  ;;  %362 = vmatpush1.bf16.msra.mxu1 %v356_v46 }
  0x96   :  { %v409_v49 = vpop.permute.xlu0 %408 }
  0x97   :  { %v413_v50 = vsel %vm412_vm7, %v407_v42, %v409_v49  ;;  %v414_v51 = vsel %vm412_vm7, %v409_v49, %v411_v47 }
  0x98   :  { %v419_v52 = vsel %vm54_vm0, %v413_v50, 0  ;;  %1579 = vmatmul.mubr.msk.bf16.vlgmr.msra.gmra.mrb[8].mxu1 %vm50_vm1, %v1577_v48  ;;  %1581 = vmatprep.subr.msk.bf16.mxu0 %vm54_vm0, %v414_v51 }
  0x99   :  { %v472_v53 = vpop.permute.xlu1 %471  ;;  %425 = vmatpush1.bf16.msra.mxu0 %v419_v52  ;;  %519 = vmatprep.mubr.bf16.mxu1 %v1698_v1 }
  0x9a   :  { %v470_v55 = vpop.permute.xlu0 %469 }
  0x9b   :  { %v476_v57 = vsel %vm475_vm8, %v470_v55, %v472_v53 }
  0x9c   :  { %1582 = vmatmul.mubr.msk.bf16.vlgmr.msra.gmra.mrb[12].mxu0 %vm50_vm1, %v1580_v54  ;;  %v482_v60 = vsel %vm54_vm0, %v476_v57, 0 }
  0x9d   :  { %v533_v56 = vpop.permute.xlu1 %532  ;;  %582 = vmatprep.mubr.bf16.mxu0 %v1698_v1 }
  0x9e   :  { %v474_v58 = vpop.permute.xlu0 %473 }
  0x9f   :  { %v477_v59 = vsel %vm475_vm8, %v472_v53, %v474_v58 }
  0xa0   :  { %1584 = vmatprep.subr.msk.bf16.mxu1 %vm54_vm0, %v477_v59 }
  0xa1   :  { %v537_v61 = vpop.permute.xlu1 %536  ;;  %488 = vmatpush1.bf16.msra.mxu1 %v482_v60 }
  0xa2   :  { %v535_v63 = vpop.permute.xlu0 %534  ;;  %1639 = vmatprep.subr.mxu1 %v1707_v16 }
  0xa3   :  { %v539_v0 = vsel %vm538_vm9, %v533_v56, %v535_v63  ;;  %v540_v2 = vsel %vm538_vm9, %v535_v63, %v537_v61 }
  0xa4   :  { %v545_v3 = vsel %vm54_vm0, %v539_v0, 0  ;;  %1585 = vmatmul.mubr.msk.bf16.vlgmr.msra.gmra.mrb[12].mxu1 %vm50_vm1, %v1583_v62  ;;  %1587 = vmatprep.subr.msk.bf16.mxu0 %vm54_vm0, %v540_v2 }
  0xa5   :  { %551 = vmatpush1.bf16.msra.mxu0 %v545_v3  ;;  %v819_v13 = vpop.permute.xlu1 %818  ;;  %1641 = vmatprep.mubr.msk.f32.mxu1 %vm1708_vm10, %v1707_v16 }
  0xa8   :  { %1588 = vmatmul.mubr.msk.bf16.vlgmr.msra.gmra.mrb[16].mxu0 %vm50_vm1, %v1586_v4 }
  0xa9   :  { %867 = vmatprep.mubr.bf16.mxu0 %v1698_v1  ;;  %v823_v17 = vpop.permute.xlu1 %822 }
  0xad   :  { %v928_v22 = vpop.permute.xlu1 %927 }
  0xb1   :  { %v932_v25 = vpop.permute.xlu1 %931 }
  0xb3   :  { %v1908_v12 = vpop.permute.xlu0 %596 }
  0xb5   :  { %v991_v30 = vpop.permute.xlu1 %990 }
  0xb7   :  { %v821_v14 = vpop.permute.xlu0 %820 }
  0xb8   :  { %v824_v15 = vsel %vm47_vm2, %v819_v13, %v821_v14  ;;  %v825_v20 = vsel %vm47_vm2, %v821_v14, %v823_v17  ;;  %v602_v13 = vlaneseq }
  0xb9   :  { %v830_v18 = vsel %vm54_vm0, %v824_v15, 0  ;;  %1599 = vmatprep.subr.msk.bf16.mxu0 %vm54_vm0, %v825_v20  ;;  %v1050_v34 = vpop.permute.xlu1 %1049 }
  0xba   :  { %836 = vmatpush1.bf16.msra.mxu0 %v830_v18  ;;  %v603_v18 = vshrl.u32 %v602_v13, 7 }
  0xbb   :  { %v930_v19 = vpop.permute.xlu0 %929 }
  0xbc   :  { %v933_v24 = vsel %vm160_vm3, %v928_v22, %v930_v19  ;;  %v934_v28 = vsel %vm160_vm3, %v930_v19, %v932_v25  ;;  %v604_v22 = vsub.s32 0, %v603_v18  ;;  %v27_v25 = vld [vmem:[%s2087_s6] sm:$0x3] }
  0xbd   :  { %1600 = vmatmul.mubr.msk.bf16.vlgmr.msra.gmra.mrb[20].mxu0 %vm50_vm1, %v1595_v21  ;;  %v939_v26 = vsel %vm54_vm0, %v933_v24, 0  ;;  %1604 = vmatprep.subr.msk.bf16.mxu0 %vm54_vm0, %v934_v28  ;;  %v1054_v36 = vpop.permute.xlu1 %1053 }
  0xbe   :  { %976 = vmatprep.mubr.bf16.mxu0 %v1698_v1  ;;  %945 = vmatpush1.bf16.msra.mxu0 %v939_v26  ;;  %v608_v26 = vsub.s32 1, %v603_v18 }
  0xbf   :  { %v989_v23 = vpop.permute.xlu0 %988 }
  0xc0   :  { %v1928_v31 = vsel %vm223_vm4, %v989_v23, %v991_v30 }
  0xc3   :  { %v993_v27 = vpop.permute.xlu0 %992 }
  0xc4   :  { %v1931_v32 = vsel %vm223_vm4, %v991_v30, %v993_v27 }
  0xc5   :  { %1605 = vmatmul.mubr.msk.bf16.vlgmr.msra.gmra.mrb[24].mxu0 %vm50_vm1, %v1603_v29 }
  0xc6   :  { %1098 = vmatprep.mubr.bf16.mxu0 %v1698_v1 }
  0xc7   :  { %v1052_v33 = vpop.permute.xlu0 %1051 }
  0xc8   :  { %v1055_v35 = vsel %vm286_vm5, %v1050_v34, %v1052_v33  ;;  %v1056_v38 = vsel %vm286_vm5, %v1052_v33, %v1054_v36  ;;  %v1942_v33 = vrot.slane %v27_v25, %v604_v22  ;;  %v1944_v36 = vrot.slane %v27_v25, %v608_v26 }
  0xc9   :  { %v1061_v37 = vsel %vm54_vm0, %v1055_v35, 0  ;;  %1610 = vmatprep.subr.msk.bf16.mxu0 %vm54_vm0, %v1056_v38 }
  0xca   :  { %1067 = vmatpush1.bf16.msra.mxu0 %v1061_v37 }
  0xdb   :  { %v145_v5 = vpop.f32.mrb[0].mxu1 }
  0xdc   :  { %v147_v6 = vpop.f32.mrb[1].mxu1 }
  0xdd   :  { %v149_v7 = vpop.f32.mrb[2].mxu1 }
  0xde   :  { %v150_v9 = vpop.f32.mrb[3].mxu1 }
 0x153   :  { %v95_v39 = vpop.f32.mrb[0].mxu0 }
 0x154   :  { %v97_v40 = vpop.f32.mrb[1].mxu0  ;;  %v146_v41 = vadd.f32 %v145_v5, %v95_v39 }
 0x155   :  { %v99_v42 = vpop.f32.mrb[2].mxu0  ;;  %v148_v43 = vadd.f32 %v147_v6, %v97_v40 }
 0x156   :  { %v100_v44 = vpop.f32.mrb[3].mxu0 }
 0x15b   :  { %v206_v45 = vpop.f32.mrb[4].mxu0 }
 0x15c   :  { %v213_v46 = vadd.f32 %v206_v45, %v146_v41  ;;  %v208_v47 = vpop.f32.mrb[5].mxu0 }
 0x15d   :  { %v214_v48 = vadd.f32 %v208_v47, %v148_v43  ;;  %v210_v49 = vpop.f32.mrb[6].mxu0  ;;  %v1113_v47 = vpop.permute.xlu1 %1112 }
 0x15e   :  { %v211_v50 = vpop.f32.mrb[7].mxu0 }
 0x15f   :  { %v269_v51 = vpop.f32.mrb[4].mxu1 }
 0x160   :  { %v276_v52 = vadd.f32 %v269_v51, %v213_v46  ;;  %v271_v53 = vpop.f32.mrb[5].mxu1  ;;  %v1624_v46 = vld [vmem:[%s2086_s2 + $0x8] sm:$0xff] }
 0x161   :  { %v277_v54 = vadd.f32 %v271_v53, %v214_v48  ;;  %v273_v55 = vpop.f32.mrb[6].mxu1  ;;  %v1111_v48 = vpop.permute.xlu0 %1110 }
 0x162   :  { %v274_v56 = vpop.f32.mrb[7].mxu1  ;;  %v1172_v50 = vpop.permute.xlu1 %1171 }
 0x163   :  { %v332_v57 = vpop.f32.mrb[8].mxu0 }
 0x164   :  { %v339_v58 = vadd.f32 %v332_v57, %v276_v52  ;;  %v334_v59 = vpop.f32.mrb[9].mxu0  ;;  %v1989_v52 = vld [vmem:[%s2088_s3] sm:$0xff] }
 0x165   :  { %v340_v60 = vadd.f32 %v334_v59, %v277_v54  ;;  %v336_v61 = vpop.f32.mrb[10].mxu0  ;;  %v1115_v51 = vpop.permute.xlu0 %1114  ;;  %v880_v54 = vsel %vm54_vm0, %v1792_v8, 0  ;;  %v808_v59 = vld [vmem:[%s2085_s1] sm:$0xf] }
 0x166   :  { %v337_v62 = vpop.f32.mrb[11].mxu0  ;;  %v1000_v61 = vsel %vm54_vm0, %v1928_v31, 0  ;;  %v1606_v31 = vld [vmem:[%s2085_s1 + $0xc] sm:$0xf] }
 0x16b   :  { %v395_v63 = vpop.f32.mrb[8].mxu1 }
 0x16c   :  { %v402_v0 = vadd.f32 %v395_v63, %v339_v58  ;;  %v397_v2 = vpop.f32.mrb[9].mxu1  ;;  %v1117_v63 = vsel %vm349_vm6, %v1113_v47, %v1115_v51 }
 0x16d   :  { %v403_v3 = vadd.f32 %v397_v2, %v340_v60  ;;  %v399_v4 = vpop.f32.mrb[10].mxu1  ;;  %v1615_v60 = vld [vmem:[%s2085_s1 + $0x18] sm:$0xf]  ;;  %v1116_v2 = vsel %vm349_vm6, %v1111_v48, %v1113_v47 }
 0x16e   :  { %v400_v5 = vpop.f32.mrb[11].mxu1 }
 0x16f   :  { %v458_v6 = vpop.f32.mrb[12].mxu0  ;;  %v1122_v5 = vsel %vm54_vm0, %v1116_v2, 0 }
 0x170   :  { %v465_v7 = vadd.f32 %v458_v6, %v402_v0  ;;  %v460_v9 = vpop.f32.mrb[13].mxu0 }
 0x171   :  { %v466_v14 = vadd.f32 %v460_v9, %v403_v3  ;;  %v462_v15 = vpop.f32.mrb[14].mxu0 }
 0x172   :  { %v463_v17 = vpop.f32.mrb[15].mxu0  ;;  %v1621_v15 = vld [vmem:[%s2085_s1 + $0x20] sm:$0xf] }
 0x173   :  { %v1612_v17 = vld [vmem:[%s2085_s1 + $0x14] sm:$0xf] }
 0x177   :  { %v521_v19 = vpop.f32.mrb[12].mxu1 }
 0x178   :  { %v528_v20 = vadd.f32 %v521_v19, %v465_v7  ;;  %v523_v21 = vpop.f32.mrb[13].mxu1  ;;  %v1618_v19 = vld [vmem:[%s2085_s1 + $0x1c] sm:$0xf] }
 0x179   :  { %v529_v23 = vadd.f32 %v523_v21, %v466_v14  ;;  %v525_v24 = vpop.f32.mrb[14].mxu1 }
 0x17a   :  { %v526_v27 = vpop.f32.mrb[15].mxu1 }
 0x17b   :  { %v584_v28 = vpop.f32.mrb[16].mxu0 }
 0x17c   :  { %v591_v29 = vadd.f32 %v584_v28, %v528_v20  ;;  %v586_v30 = vpop.f32.mrb[17].mxu0 }
 0x17d   :  { %v592_v34 = vadd.f32 %v586_v30, %v529_v23  ;;  %v588_v35 = vpop.f32.mrb[18].mxu0 }
 0x17e   :  { %v1947_v37 = vadd.f32 %v1908_v12, %v591_v29  ;;  %v589_v38 = vpop.f32.mrb[19].mxu0 }
 0x17f   :  { %v1950_v39 = vadd.f32 %v1908_v12, %v592_v34  ;;  %v1609_v12 = vld [vmem:[%s2085_s1 + $0x10] sm:$0xf] }
 0x180   :  { %v612_v40 = vmul.f32 %v1942_v33, %v1947_v37  ;;  %1611 = vmatmul.mubr.msk.bf16.vlgmr.msra.gmra.mrb[28].mxu0 %vm50_vm1, %v1609_v12 }
 0x181   :  { %v613_v41 = vmul.f32 %v1944_v36, %v1950_v39  ;;  %1220 = vmatprep.mubr.bf16.mxu0 %v1698_v1 }
 0x182   :  { %v617_v42 = vmul.f32 %v612_v40, %v1947_v37 }
 0x183   :  { %v614_v43 = vadd.f32 %v613_v41, %v612_v40  ;;  %v618_v44 = vmul.f32 %v613_v41, %v1950_v39 }
 0x185   :  { %615 = vadd.xlane.f32.xlu1 %v614_v43  ;;  %v619_v45 = vadd.f32 %v618_v44, %v617_v42 }
 0x187   :  { %620 = vadd.xlane.f32.xlu0 %v619_v45 }
 0x190   :  { %v1984_v49 = vpop.f32.mrb[20].mxu0 }
 0x191   :  { %v871_v20 = vpop.f32.mrb[21].mxu0 }
 0x192   :  { %v873_v21 = vpop.f32.mrb[22].mxu0 }
 0x193   :  { %v874_v22 = vpop.f32.mrb[23].mxu0 }
 0x196   :  { %1175 = vrot.lane.b32.xlu1 %v1803_v10, %s1704_s12 }
 0x198   :  { %v978_v23 = vpop.f32.mrb[24].mxu0 }
 0x199   :  { %v980_v24 = vpop.f32.mrb[25].mxu0 }
 0x19a   :  { %1234 = vrot.lane.b32.xlu1 %v1805_v11, %s1705_s13  ;;  %v982_v25 = vpop.f32.mrb[26].mxu0 }
 0x19b   :  { %v983_v26 = vpop.f32.mrb[27].mxu0 }
 0x19d   :  { %1173 = vrot.lane.b32.xlu0 %v1805_v11, %s1704_s12 }
 0x19e   :  { %1293 = vrot.lane.b32.xlu1 %v1792_v8, %s1706_s14 }
 0x1a1   :  { %1232 = vrot.lane.b32.xlu0 %v1792_v8, %s1705_s13 }
 0x1a2   :  { %1297 = vrot.lane.b32.xlu1 %v1803_v10, %s1706_s14 }
 0x1a5   :  { %1236 = vrot.lane.b32.xlu0 %v1803_v10, %s1705_s13 }
 0x1a9   :  { %1295 = vrot.lane.b32.xlu0 %v1805_v11, %s1706_s14 }
 0x1ad   :  { %1357 = vperm.xlu0 %1670, %v1624_v46  }
 0x212   :  { %v616_v10 = vpop.xlane.xlu1 %615 }
 0x213   :  { %1640 = vmatpush3.msra.mxu1 %v616_v10 }
 0x214   :  { %v621_v53 = vpop.xlane.xlu0 %620  ;;  %1642 = vmatmul.mubr.msk.f32.vlgmr.msra.gmra.mrb[16].mxu1 %vm50_vm1, %v1989_v52  ;;  %1644 = vmatprep.subr.mxu1 %v1707_v16 }
 0x215   :  { %1645 = vmatpush3.msra.mxu1 %v621_v53  ;;  %1646 = vmatprep.mubr.msk.f32.mxu1 %vm1708_vm10, %v1707_v16 }
 0x216   :  { %1601 = vmatprep.subr.msk.bf16.mxu1 %vm54_vm0, %v1805_v11  ;;  %v1176_v55 = vpop.permute.xlu1 %1175 }
 0x218   :  { %v1174_v56 = vpop.permute.xlu0 %1173  ;;  %1647 = vmatmul.mubr.msk.f32.vlgmr.msra.gmra.mrb[18].mxu1 %vm50_vm1, %v1989_v52 }
 0x219   :  { %v1177_v57 = vsel %vm412_vm7, %v1172_v50, %v1174_v56  ;;  %886 = vmatpush1.bf16.msra.mxu1 %v880_v54  ;;  %v1178_v58 = vsel %vm412_vm7, %v1174_v56, %v1176_v55  ;;  %917 = vmatprep.mubr.bf16.mxu1 %v1698_v1 }
 0x21a   :  { %v1183_v11 = vsel %vm54_vm0, %v1177_v57, 0  ;;  %1607 = vmatprep.subr.msk.bf16.mxu1 %vm54_vm0, %v1931_v32  ;;  %1616 = vmatprep.subr.msk.bf16.mxu0 %vm54_vm0, %v1178_v58  ;;  %v1235_v8 = vpop.permute.xlu1 %1234  ;;  %v770_v58 = vld [vmem:[%s2089_s4] sm:$0xff] }
 0x21b   :  { %1189 = vmatpush1.bf16.msra.mxu0 %v1183_v11 }
 0x21c   :  { %1602 = vmatmul.mubr.msk.bf16.vlgmr.msra.gmra.mrb[20].mxu1 %vm50_vm1, %v808_v59  ;;  %v1233_v62 = vpop.permute.xlu0 %1232 }
 0x21d   :  { %1006 = vmatpush1.bf16.msra.mxu1 %v1000_v61  ;;  %1037 = vmatprep.mubr.bf16.mxu1 %v1698_v1  ;;  %v1238_v14 = vsel %vm475_vm8, %v1233_v62, %v1235_v8 }
 0x21e   :  { %1613 = vmatprep.subr.msk.bf16.mxu1 %vm54_vm0, %v1117_v63  ;;  %v1294_v32 = vpop.permute.xlu1 %1293  ;;  %1617 = vmatmul.mubr.msk.bf16.vlgmr.msra.gmra.mrb[32].mxu0 %vm50_vm1, %v1615_v60  ;;  %v1244_v18 = vsel %vm54_vm0, %v1238_v14, 0 }
 0x21f   :  { %1342 = vmatprep.mubr.bf16.mxu0 %v1698_v1 }
 0x220   :  { %v1237_v0 = vpop.permute.xlu0 %1236 }
 0x221   :  { %v1239_v4 = vsel %vm475_vm8, %v1235_v8, %v1237_v0 }
 0x222   :  { %v1298_v3 = vpop.permute.xlu1 %1297 }
 0x224   :  { %1608 = vmatmul.mubr.msk.bf16.vlgmr.msra.gmra.mrb[24].mxu1 %vm50_vm1, %v1606_v31  ;;  %v1296_v6 = vpop.permute.xlu0 %1295 }
 0x225   :  { %1128 = vmatpush1.bf16.msra.mxu1 %v1122_v5  ;;  %v1299_v7 = vsel %vm538_vm9, %v1294_v32, %v1296_v6  ;;  %1159 = vmatprep.mubr.bf16.mxu1 %v1698_v1  ;;  %v1300_v9 = vsel %vm538_vm9, %v1296_v6, %v1298_v3 }
 0x226   :  { %v1305_v13 = vsel %vm54_vm0, %v1299_v7, 0  ;;  %1619 = vmatprep.subr.msk.bf16.mxu1 %vm54_vm0, %v1239_v4  ;;  %1622 = vmatprep.subr.msk.bf16.mxu0 %vm54_vm0, %v1300_v9 }
 0x227   :  { %1311 = vmatpush1.bf16.msra.mxu0 %v1305_v13 }
 0x22a   :  { %1623 = vmatmul.mubr.msk.bf16.vlgmr.msra.gmra.mrb[36].mxu0 %vm50_vm1, %v1621_v15 }
 0x22c   :  { %1614 = vmatmul.mubr.msk.bf16.vlgmr.msra.gmra.mrb[28].mxu1 %vm50_vm1, %v1612_v17 }
 0x22d   :  { %1250 = vmatpush1.bf16.msra.mxu1 %v1244_v18  ;;  %1281 = vmatprep.mubr.bf16.mxu1 %v1698_v1 }
 0x22e   :  { %1649 = vmatprep.subr.mxu1 %v1707_v16 }
 0x234   :  { %1620 = vmatmul.mubr.msk.bf16.vlgmr.msra.gmra.mrb[32].mxu1 %vm50_vm1, %v1618_v19 }
 0x235   :  { %1651 = vmatprep.mubr.msk.f32.mxu1 %vm1708_vm10, %v1707_v16 }
 0x253   :  { %v1100_v27 = vpop.f32.mrb[28].mxu0 }
 0x254   :  { %v1102_v1 = vpop.f32.mrb[29].mxu0 }
 0x255   :  { %v1104_v28 = vpop.f32.mrb[30].mxu0 }
 0x256   :  { %v1105_v29 = vpop.f32.mrb[31].mxu0 }
 0x2e7   :  { %v692_v30 = vpop.f32.mrb[16].mxu1 }
 0x2e8   :  { %v1643_v34 = vpop.f32.mrb[17].mxu1  ;;  %v766_v35 = vmul.f32 %v692_v30, %v692_v30 }
 0x2eb   :  { %v762_v38 = vpop.f32.mrb[18].mxu1 }
 0x2ec   :  { %v767_v40 = vsub.f32 %v762_v38, %v766_v35  ;;  %v1648_v41 = vpop.f32.mrb[19].mxu1 }
 0x2ee   :  { %v768_v42 = vadd.f32 1e-06, %v767_v40 }
 0x2ef   :  { %v919_v43 = vpop.f32.mrb[20].mxu1 }
 0x2f0   :  { %1678 = vrsqrt.f32 %v768_v42  ;;  %v920_v44 = vadd.f32 %v919_v43, %v1984_v49  ;;  %v921_v45 = vpop.f32.mrb[21].mxu1 }
 0x2f1   :  { %v922_v12 = vadd.f32 %v921_v45, %v871_v20  ;;  %v923_v46 = vpop.f32.mrb[22].mxu1  ;;  %v1222_v47 = vpop.f32.mrb[32].mxu0 }
 0x2f2   :  { %v924_v48 = vpop.f32.mrb[23].mxu1  ;;  %v985_v50 = vadd.f32 %v978_v23, %v920_v44  ;;  %v1224_v51 = vpop.f32.mrb[33].mxu0  ;;  %v772_v46 = vld [vmem:[%s2090_s5] sm:$0xff] }
 0x2f3   :  { %v986_v10 = vadd.f32 %v980_v24, %v922_v12  ;;  %v1226_v53 = vpop.f32.mrb[34].mxu0  ;;  %v1358_v23 = vpop.permute.xlu0 %1357 }
 0x2f4   :  { %v1227_v54 = vpop.f32.mrb[35].mxu0 }
 0x2f7   :  { %v1039_v55 = vpop.f32.mrb[24].mxu1 }
 0x2f8   :  { %v1046_v56 = vadd.f32 %v1039_v55, %v985_v50  ;;  %v1041_v57 = vpop.f32.mrb[25].mxu1 }
 0x2f9   :  { %v1047_v59 = vadd.f32 %v1041_v57, %v986_v10  ;;  %v1043_v11 = vpop.f32.mrb[26].mxu1 }
 0x2fa   :  { %v1679_v49 = vpop.eup %1678  ;;  %v1044_v8 = vpop.f32.mrb[27].mxu1  ;;  %v1107_v60 = vadd.f32 %v1100_v27, %v1046_v56 }
 0x2fb   :  { %v1108_v61 = vadd.f32 %v1102_v1, %v1047_v59  ;;  %v771_v62 = vmul.f32 %v1679_v49, %v770_v58 }
 0x2fd   :  { %v1344_v63 = vpop.f32.mrb[36].mxu0  ;;  %v773_v32 = vmul.f32 %v771_v62, %v692_v30 }
 0x2fe   :  { %v1346_v0 = vpop.f32.mrb[37].mxu0 }
 0x2ff   :  { %v1161_v2 = vpop.f32.mrb[28].mxu1  ;;  %v1348_v31 = vpop.f32.mrb[38].mxu0 }
 0x300   :  { %v1168_v3 = vadd.f32 %v1161_v2, %v1107_v60  ;;  %v1163_v4 = vpop.f32.mrb[29].mxu1  ;;  %v1349_v5 = vpop.f32.mrb[39].mxu0 }
 0x301   :  { %v1169_v6 = vadd.f32 %v1163_v4, %v1108_v61  ;;  %v1165_v7 = vpop.f32.mrb[30].mxu1 }
 0x302   :  { %v1166_v9 = vpop.f32.mrb[31].mxu1  ;;  %v1229_v13 = vadd.f32 %v1222_v47, %v1168_v3 }
 0x303   :  { %v1230_v14 = vadd.f32 %v1224_v51, %v1169_v6 }
 0x307   :  { %v1283_v15 = vpop.f32.mrb[32].mxu1 }
 0x308   :  { %v1290_v17 = vadd.f32 %v1283_v15, %v1229_v13  ;;  %v1285_v18 = vpop.f32.mrb[33].mxu1 }
 0x309   :  { %v1291_v19 = vadd.f32 %v1285_v18, %v1230_v14  ;;  %v1287_v20 = vpop.f32.mrb[34].mxu1 }
 0x30a   :  { %v1351_v21 = vadd.f32 %v1344_v63, %v1290_v17  ;;  %v1288_v22 = vpop.f32.mrb[35].mxu1 }
 0x30b   :  { %v1352_v24 = vadd.f32 %v1346_v0, %v1291_v19 }
 0x30c   :  { %v1360_v25 = vadd.f32 %v1358_v23, %v1351_v21 }
 0x30d   :  { %v1361_v26 = vadd.f32 %v1358_v23, %v1352_v24 }
 0x30e   :  { %v1362_v27 = vmul.f32 %v1360_v25, %v1942_v33 }
 0x30f   :  { %v1363_v1 = vmul.f32 %v1361_v26, %v1944_v36 }
 0x310   :  { %v1367_v28 = vmul.f32 %v1362_v27, %v1360_v25 }
 0x311   :  { %v1364_v29 = vadd.f32 %v1363_v1, %v1362_v27  ;;  %v1368_v30 = vmul.f32 %v1363_v1, %v1361_v26 }
 0x313   :  { %1365 = vadd.xlane.f32.xlu1 %v1364_v29  ;;  %v1369_v34 = vadd.f32 %v1368_v30, %v1367_v28 }
 0x315   :  { %1370 = vadd.xlane.f32.xlu0 %v1369_v34 }
 0x32b   :  { %777 = vperm.xlu0 %1670, %v771_v62  }
 0x3a0   :  { %v1366_v35 = vpop.xlane.xlu1 %1365 }
 0x3a1   :  { %1650 = vmatpush3.msra.mxu1 %v1366_v35 }
 0x3a2   :  { %v1371_v38 = vpop.xlane.xlu0 %1370  ;;  %1652 = vmatmul.mubr.msk.f32.vlgmr.msra.gmra.mrb[36].mxu1 %vm50_vm1, %v1989_v52  ;;  %1654 = vmatprep.subr.mxu1 %v1707_v16 }
 0x3a3   :  { %1655 = vmatpush3.msra.mxu1 %v1371_v38  ;;  %1656 = vmatprep.mubr.msk.f32.mxu1 %vm1708_vm10, %v1707_v16  ;;  %v774_v16 = vsub.f32 %v772_v46, %v773_v32 }
 0x3a6   :  { %1657 = vmatmul.mubr.msk.f32.vlgmr.msra.gmra.mrb[38].mxu1 %vm50_vm1, %v1989_v52 }
 0x3aa   :  { %v778_v52 = vpop.permute.xlu0 %777 }
 0x3ab   :  { %v780_v51 = vmul.f32 %v778_v52, %v1947_v37  ;;  %v781_v10 = vmul.f32 %v778_v52, %v1950_v39 }
 0x475   :  { %v1442_v33 = vpop.f32.mrb[36].mxu1 }
 0x476   :  { %v1653_v36 = vpop.f32.mrb[37].mxu1  ;;  %v1516_v40 = vmul.f32 %v1442_v33, %v1442_v33 }
 0x479   :  { %v1512_v41 = vpop.f32.mrb[38].mxu1 }
 0x47a   :  { %v1517_v42 = vsub.f32 %v1512_v41, %v1516_v40  ;;  %v1658_v43 = vpop.f32.mrb[39].mxu1 }
 0x47c   :  { %v1518_v44 = vadd.f32 1e-06, %v1517_v42 }
 0x47e   :  { %1680 = vrsqrt.f32 %v1518_v44 }
 0x488   :  { %v1681_v45 = vpop.eup %1680 }
 0x489   :  { %v1521_v12 = vmul.f32 %v1681_v45, %v770_v58 }
 0x48b   :  { %1527 = vperm.xlu1 %1671, %v1521_v12   ;;  %v1523_v47 = vmul.f32 %v1521_v12, %v1442_v33 }
 0x48d   :  { %v1524_v48 = vsub.f32 %v772_v46, %v1523_v47 }
 0x48f   :  { %784 = vperm.xlu1 %1671, %v774_v16   ;;  %1534 = vperm.xlu0 %1670, %v1524_v48  }
 0x50a   :  { %v1528_v50 = vpop.permute.xlu1 %1527 }
 0x50b   :  { %v1530_v53 = vmul.f32 %v1528_v50, %v1360_v25  ;;  %v1531_v54 = vmul.f32 %v1528_v50, %v1361_v26 }
 0x50e   :  { %v785_v55 = vpop.permute.xlu1 %784  ;;  %v1535_v56 = vpop.permute.xlu0 %1534 }
 0x50f   :  { %v787_v57 = vadd.f32 %v785_v55, %v780_v51  ;;  %v788_v58 = vadd.f32 %v785_v55, %v781_v10  ;;  %v1537_v59 = vadd.f32 %v1535_v56, %v1530_v53  ;;  %v1538_v11 = vadd.f32 %v1535_v56, %v1531_v54 }
 0x511   :  { %v1591_v49 = vmul.f32 -1.442695, %v787_v57  ;;  %v1592_v8 = vmul.f32 -1.442695, %v788_v58  ;;  %v1627_v60 = vmul.f32 -1.442695, %v1537_v59 }
 0x512   :  { %v1628_v61 = vmul.f32 -1.442695, %v1538_v11 }
 0x513   :  { %1682 = vpow2.f32 %v1591_v49 }
 0x514   :  { %1684 = vpow2.f32 %v1592_v8 }
 0x515   :  { %1686 = vpow2.f32 %v1627_v60 }
 0x516   :  { %1688 = vpow2.f32 %v1628_v61 }
 0x51d   :  { %v1683_v62 = vpop.eup %1682 }
 0x51e   :  { %v1685_v37 = vpop.eup %1684  ;;  %v795_v63 = vadd.f32 1.0, %v1683_v62 }
 0x51f   :  { %v1687_v39 = vpop.eup %1686  ;;  %v796_v32 = vadd.f32 1.0, %v1685_v37 }
 0x520   :  { %v1689_v0 = vpop.eup %1688  ;;  %1690 = vrcp.f32 %v795_v63  ;;  %v1545_v2 = vadd.f32 1.0, %v1687_v39 }
 0x521   :  { %1692 = vrcp.f32 %v796_v32  ;;  %v1546_v31 = vadd.f32 1.0, %v1689_v0 }
 0x522   :  { %1694 = vrcp.f32 %v1545_v2 }
 0x523   :  { %1696 = vrcp.f32 %v1546_v31 }
 0x52a   :  { %v1691_v3 = vpop.eup %1690 }
 0x52b   :  { %v1693_v4 = vpop.eup %1692  ;;  %v801_v5 = vmul.f32 %v1691_v3, %v787_v57 }
 0x52c   :  { %v1695_v6 = vpop.eup %1694  ;;  %v802_v7 = vmul.f32 %v1693_v4, %v788_v58 }
 0x52d   :  { %v1697_v9 = vpop.eup %1696  ;;  %803 = vst [vmem:[%s2091_s7] sm:$0xff] %v801_v5  ;;  %v1551_v13 = vmul.f32 %v1695_v6, %v1537_v59 }
 0x52e   :  { %804 = vst [vmem:[%s2091_s7 + $0x8] sm:$0xff] %v802_v7  ;;  %v1552_v14 = vmul.f32 %v1697_v9, %v1538_v11 }
 0x52f   :  { %1629 = vst [vmem:[%s2091_s7 + $0x10] sm:$0xff] %v1551_v13 }
 0x530   :  { %1630 = vst [vmem:[%s2091_s7 + $0x18] sm:$0xff] %v1552_v14 }

</bundles_post_ra>
